<compile_context>
chip_gen: v7x
topology: tpu7x:2x2x1
jax: 0.10.0
libtpu: 0.0.40
codegen_flags: <defaults>
</compile_context>

<pallas_src>
import functools

import jax
import jax.numpy as jnp
from jax.experimental import pallas as pl
from jax.experimental.pallas import tpu as pltpu


def _chip_defaults():
    """Best-effort per-generation knobs; only affects performance, not results."""
    kind = ""
    try:
        kind = jax.devices()[0].device_kind.lower()
    except Exception:
        pass
    if "v7" in kind:
        # 2 TCs/chip, 64 MiB physical VMEM, ~3.2 TB/s HBM: big tiles + core split.
        return dict(max_tile_bytes=8 << 20, num_splits=2,
                    vmem_limit=48 << 20, core_parallel=True)
    if "v6" in kind:
        return dict(max_tile_bytes=4 << 20, num_splits=1,
                    vmem_limit=48 << 20, core_parallel=False)
    if "v5e" in kind or ("v5" in kind and "lite" in kind):
        # v5e: raise scoped VMEM (128 MiB physical) so 4 MiB tiles keep headroom.
        return dict(max_tile_bytes=4 << 20, num_splits=1,
                    vmem_limit=48 << 20, core_parallel=False)
    if "v5" in kind or "v4" in kind:
        # Megacore chips (2 TCs behind one device): plain "parallel" splits work.
        return dict(max_tile_bytes=4 << 20, num_splits=2,
                    vmem_limit=48 << 20, core_parallel=False)
    # Unknown hardware: conservative defaults, leave scoped-VMEM limit alone.
    return dict(max_tile_bytes=3 << 20, num_splits=1,
                vmem_limit=None, core_parallel=False)


def _mse_partial_kernel(pred_ref, targ_ref, out_ref, *,
                        tile_rows, steps_per_split, n_tiles, m_rows, need_mask):
    j = pl.program_id(1)

    # Output block is resident across the reduction axis (index_map ignores j):
    # zero it once per split, accumulate directly into it.
    @pl.when(j == 0)
    def _():
        out_ref[...] = jnp.zeros_like(out_ref)

    # Cast to f32 inside the kernel (keeps HBM traffic at the native dtype).
    d = pred_ref[...].astype(jnp.float32) - targ_ref[...].astype(jnp.float32)
    sq = d * d

    if need_mask:
        i = pl.program_id(0)
        tile_idx = i * steps_per_split + j
        is_edge = tile_idx >= (n_tiles - 1)  # tail tile + any overshoot tiles

        @pl.when(jnp.logical_not(is_edge))
        def _():
            out_ref[...] += jnp.sum(sq, axis=0, keepdims=True).reshape(out_ref.shape)

        @pl.when(is_edge)
        def _():
            # Local row ids compared against the remaining valid rows; overshoot
            # tiles (tile_idx >= n_tiles) get a non-positive bound -> all zero.
            local_rows = jax.lax.broadcasted_iota(jnp.int32, sq.shape, 0)
            valid = local_rows < (m_rows - tile_idx * tile_rows)
            masked = jnp.where(valid, sq, 0.0)
            out_ref[...] += jnp.sum(masked, axis=0, keepdims=True).reshape(out_ref.shape)
    else:
        out_ref[...] += jnp.sum(sq, axis=0, keepdims=True).reshape(out_ref.shape)


def mse_loss_pallas(pred, target, loss_weight=1.0, reduction="mean",
                    tile_rows=None, num_splits=None):
    assert pred.shape == target.shape, "pred and target must have the same shape"
    assert reduction in ("mean", "sum"), "only 'mean' and 'sum' supported here"
    # TODO(synk): reduction='none' (elementwise output) not implemented; module default is 'mean'.

    cfg = _chip_defaults()
    max_tile_bytes = cfg["max_tile_bytes"]
    vmem_limit = cfg["vmem_limit"]
    core_parallel = cfg["core_parallel"]
    if num_splits is None:
        num_splits = cfg["num_splits"]

    n_elems = int(pred.size)
    itemsize = jnp.dtype(pred.dtype).itemsize

    # Lane-dense last dim that divides the element count -> zero-copy reshape.
    pred_flat = pred.reshape(-1)
    targ_flat = target.reshape(-1)
    lanes = None
    for cand in (1024, 512, 256, 128):
        if n_elems % cand == 0:
            lanes = cand
            break
    if lanes is None:
        # Ragged fallback: pad only up to the next multiple of 128 lanes.
        lanes = 128
        pad = (-n_elems) % lanes
        pred_flat = jnp.pad(pred_flat, (0, pad))
        targ_flat = jnp.pad(targ_flat, (0, pad))
    m_rows = int(pred_flat.size) // lanes
    pred2d = pred_flat.reshape(m_rows, lanes)
    targ2d = targ_flat.reshape(m_rows, lanes)

    # Tile sizing: derive rows from the per-chip byte budget so sub-32-bit
    # dtypes get the same byte-sized (not row-sized) tiles as f32.
    rows_budget = max(8, ((max_tile_bytes // (lanes * itemsize)) // 8) * 8)
    if tile_rows is None:
        tile_rows = rows_budget
    tile_rows = min(int(tile_rows), rows_budget, m_rows)
    if tile_rows < m_rows:
        tile_rows = max(8, (tile_rows // 8) * 8)

    n_tiles = -(-m_rows // tile_rows)
    num_splits = max(1, min(int(num_splits), n_tiles))
    steps_per_split = -(-n_tiles // num_splits)
    need_mask = (num_splits * steps_per_split * tile_rows) != m_rows

    if num_splits * steps_per_split > n_tiles:
        # Overshooting grid points re-read the last tile (their contribution is
        # zeroed in-kernel by the row mask).
        def in_index_map(i, j):
            return (jnp.minimum(i * steps_per_split + j, n_tiles - 1), 0)
    else:
        def in_index_map(i, j):
            return (i * steps_per_split + j, 0)

    kernel = functools.partial(
        _mse_partial_kernel,
        tile_rows=tile_rows,
        steps_per_split=steps_per_split,
        n_tiles=n_tiles,
        m_rows=m_rows,
        need_mask=need_mask,
    )

    cost = pl.CostEstimate(
        flops=3 * n_elems,
        transcendentals=0,
        bytes_accessed=2 * n_elems * itemsize + num_splits * lanes * 4,
    )

    cp_kwargs = {}
    if vmem_limit is not None:
        cp_kwargs["vmem_limit_bytes"] = int(vmem_limit)

    def _call(dim_sems):
        return pl.pallas_call(
            kernel,
            out_shape=jax.ShapeDtypeStruct((num_splits, 1, lanes), jnp.float32),
            grid_spec=pltpu.PrefetchScalarGridSpec(
                num_scalar_prefetch=0,
                grid=(num_splits, steps_per_split),
                in_specs=[
                    pl.BlockSpec((tile_rows, lanes), in_index_map),
                    pl.BlockSpec((tile_rows, lanes), in_index_map),
                ],
                out_specs=pl.BlockSpec((1, 1, lanes), lambda i, j: (i, 0, 0)),
            ),
            compiler_params=pltpu.CompilerParams(
                dimension_semantics=dim_sems, **cp_kwargs),
            cost_estimate=cost,
        )(pred2d, targ2d)

    # On multi-TC chips (v7x) force the row-range split onto both cores with
    # CORE_PARALLEL; fall back to plain "parallel" if that lowering is rejected.
    candidates = []
    if core_parallel and num_splits > 1 and hasattr(pltpu, "CORE_PARALLEL"):
        candidates.append((pltpu.CORE_PARALLEL, pltpu.ARBITRARY))
    candidates.append(("parallel", "arbitrary"))

    partials = None
    last_err = None
    for sems in candidates:
        try:
            partials = _call(sems)
            break
        except Exception as e:  # fall back to the next dimension_semantics choice
            last_err = e
    if partials is None:
        raise last_err

    # Tiny epilogue (num_splits * lanes values): cross-lane/per-split combine,
    # mean normalization and loss_weight scaling.
    total = jnp.sum(partials)
    if reduction == "mean":
        total = total / jnp.float32(n_elems)
    total = jnp.asarray(loss_weight, jnp.float32) * total
    out_dtype = pred.dtype if jnp.issubdtype(pred.dtype, jnp.floating) else jnp.float32
    return total.astype(out_dtype)


if __name__ == "__main__":
    key = jax.random.PRNGKey(0)
    k1, k2, k3, k4, k5, k6 = jax.random.split(key, 6)

    # Primary check: NCHW pixel-loss shape (B, C, H, W), reduction='mean'.
    shape = (2, 4, 16, 16)
    pred = jax.random.normal(k1, shape, dtype=jnp.float32)
    target = jax.random.normal(k2, shape, dtype=jnp.float32)
    loss = mse_loss_pallas(pred, target, loss_weight=1.0, reduction="mean")
    loss = jax.block_until_ready(loss)
    ref = 1.0 * jnp.mean((pred - target) ** 2)
    assert jnp.allclose(loss, ref, rtol=1e-5, atol=1e-6), (loss, ref)

    # Secondary check: multi-tile grid, explicit 2-way split, in-kernel ragged
    # tail-tile mask (small tile forced explicitly), reduction='sum'.
    shape2 = (2, 4, 40, 40)
    pred2 = jax.random.normal(k3, shape2, dtype=jnp.float32)
    target2 = jax.random.normal(k4, shape2, dtype=jnp.float32)
    loss2 = mse_loss_pallas(pred2, target2, loss_weight=0.5, reduction="sum",
                            tile_rows=16, num_splits=2)
    loss2 = jax.block_until_ready(loss2)
    ref2 = 0.5 * jnp.sum((pred2 - target2) ** 2)
    assert jnp.allclose(loss2, ref2, rtol=1e-5, atol=1e-5), (loss2, ref2)

    # Native-dtype (bf16) path: exercises in-kernel f32 cast + byte-budget tiles.
    pred3 = jax.random.normal(k5, shape, dtype=jnp.bfloat16)
    target3 = jax.random.normal(k6, shape, dtype=jnp.bfloat16)
    loss3 = mse_loss_pallas(pred3, target3, loss_weight=1.0, reduction="mean")
    loss3 = jax.block_until_ready(loss3)
    ref3 = jnp.mean((pred3.astype(jnp.float32) - target3.astype(jnp.float32)) ** 2)
    assert jnp.allclose(loss3.astype(jnp.float32), ref3, rtol=5e-2, atol=5e-3), (loss3, ref3)

    print("KERNEL_OK")
</pallas_src>

<mosaic_0001>
module attributes {stable_mosaic.version = 11 : i64} {
  func.func @_mse_partial_kernel(%arg0: i32, %arg1: i32, %arg2: memref<2x1024xf32, #tpu.memory_space<vmem>>, %arg3: memref<2x1024xf32, #tpu.memory_space<vmem>>, %arg4: memref<1x1x1024xf32, #tpu.memory_space<vmem>>) attributes {dimension_semantics = [#tpu.dimension_semantics<parallel>, #tpu.dimension_semantics<arbitrary>], iteration_bounds = array<i64: 1, 1>, scalar_prefetch = 0 : i64, scratch_operands = 0 : i64, tpu.core_type = #tpu.core_type<tc>, window_params = [{transform_indices = @transform_0, window_bounds = array<i64: 2, 1024>}, {transform_indices = @transform_1, window_bounds = array<i64: 2, 1024>}, {transform_indices = @transform_2, window_bounds = array<i64: 1, 1, 1024>}]} {
    %c0_i32 = arith.constant 0 : i32
    %0 = arith.cmpi eq, %arg1, %c0_i32 : i32
    %1 = arith.extui %0 : i1 to i32
    %c0_i32_0 = arith.constant 0 : i32
    %2 = arith.cmpi ne, %1, %c0_i32_0 : i32
    scf.if %2 {
      %cst_10 = arith.constant 0.000000e+00 : f32
      %13 = vector.broadcast %cst_10 : f32 to vector<1x1x1024xf32>
      %c0_11 = arith.constant 0 : index
      %c0_12 = arith.constant 0 : index
      %c0_13 = arith.constant 0 : index
      %14 = vector.load %arg4[%c0_11, %c0_12, %c0_13] : memref<1x1x1024xf32, #tpu.memory_space<vmem>>, vector<1x1x1024xf32>
      tpu.vector_store %arg4[%c0_11, %c0_12, %c0_13], %13 {strides = array<i32>} : memref<1x1x1024xf32, #tpu.memory_space<vmem>>, vector<1x1x1024xf32>,
    } else {
    }
    %c0 = arith.constant 0 : index
    %c0_1 = arith.constant 0 : index
    %3 = vector.load %arg2[%c0, %c0_1] : memref<2x1024xf32, #tpu.memory_space<vmem>>, vector<2x1024xf32>
    %c0_2 = arith.constant 0 : index
    %c0_3 = arith.constant 0 : index
    %4 = vector.load %arg3[%c0_2, %c0_3] : memref<2x1024xf32, #tpu.memory_space<vmem>>, vector<2x1024xf32>
    %5 = arith.subf %3, %4 : vector<2x1024xf32>
    %6 = arith.mulf %5, %5 : vector<2x1024xf32>
    %c0_4 = arith.constant 0 : index
    %c0_5 = arith.constant 0 : index
    %c0_6 = arith.constant 0 : index
    %7 = vector.load %arg4[%c0_4, %c0_5, %c0_6] : memref<1x1x1024xf32, #tpu.memory_space<vmem>>, vector<1x1x1024xf32>
    %cst = arith.constant dense<0.000000e+00> : vector<1024xf32>
    %8 = vector.multi_reduction <add>, %6, %cst [0] : vector<2x1024xf32> to vector<1024xf32>
    %9 = vector.shape_cast %8 : vector<1024xf32> to vector<1x1024xf32>
    %10 = vector.shape_cast %9 : vector<1x1024xf32> to vector<1x1x1024xf32>
    %11 = arith.addf %7, %10 : vector<1x1x1024xf32>
    %c0_7 = arith.constant 0 : index
    %c0_8 = arith.constant 0 : index
    %c0_9 = arith.constant 0 : index
    %12 = vector.load %arg4[%c0_7, %c0_8, %c0_9] : memref<1x1x1024xf32, #tpu.memory_space<vmem>>, vector<1x1x1024xf32>
    tpu.vector_store %arg4[%c0_7, %c0_8, %c0_9], %11 {strides = array<i32>} : memref<1x1x1024xf32, #tpu.memory_space<vmem>>, vector<1x1x1024xf32>,
    return
  }
  func.func @transform_0(%arg0: i32, %arg1: i32) -> (i32, i32) {
    %c1_i32 = arith.constant 1 : i32
    %0 = arith.muli %arg0, %c1_i32 : i32
    %1 = arith.addi %0, %arg1 : i32
    %c0_i32 = arith.constant 0 : i32
    %c0_i32_0 = arith.constant 0 : i32
    return %1, %c0_i32 : i32, i32
  }
  func.func @transform_1(%arg0: i32, %arg1: i32) -> (i32, i32) {
    %c1_i32 = arith.constant 1 : i32
    %0 = arith.muli %arg0, %c1_i32 : i32
    %1 = arith.addi %0, %arg1 : i32
    %c0_i32 = arith.constant 0 : i32
    %c0_i32_0 = arith.constant 0 : i32
    return %1, %c0_i32 : i32, i32
  }
  func.func @transform_2(%arg0: i32, %arg1: i32) -> (i32, i32, i32) {
    %c0_i32 = arith.constant 0 : i32
    %c0_i32_0 = arith.constant 0 : i32
    %c0_i32_1 = arith.constant 0 : i32
    return %arg0, %c0_i32, %c0_i32_0 : i32, i32, i32
  }
}

</mosaic_0001>

<bundles_post_ra>
// kernel: tpu_custom_call.1
= control target key start
LH: loop header
LB: loop body
LE: loop exit
PB: predicated region body
PF: predicated region fallthrough
CT: control target
= control target key end

     0   :  { %7 = vsyncpa [#allocation3], 0  ;;  %s383_s0 = inlined_call_operand.hbm [shape: f32[2,1024], index: 0, kind: input, shape index: {}]   ;;  %s384_s1 = inlined_call_operand.hbm [shape: f32[2,1024], index: 1, kind: input, shape index: {}]   ;;  %s385_s2 = inlined_call_operand.hbm [shape: f32[1,1,1024], index: 2, kind: output, shape index: {}]  }
   0x1   :  { %8 = vsyncpa [#allocation6], 0 }
   0x2   :  { %9 = vsyncpa [#allocation4], 0  ;;  %s315_s9 = smov [#allocation2]   ;;  %s316_s11 = smov [#allocation5]  }
   0x3   :  { %s20_s10 = sshll.u32 %s315_s9, 4  ;;  %s34_s12 = sshll.u32 %s316_s11, 4  ;;  %s21_s10 = int_to_ptr.vmem [resolvable:$true] %s20_s10  ;;  %s35_s12 = int_to_ptr.vmem [resolvable:$true] %s34_s12 }
   0x4   :  { %s243_s15 = scalar_lea.hbm %s383_s0, 256 }
   0x5   :  { %p244_p0 = scmp.ne.s32.totalorder %s383_s0, %s243_s15  ;;  %p247_p1 = scmp.lt.u32.totalorder %s243_s15, %s383_s0 }
   0x7   :  { %p249_p2 = pnand %p247_p1, %p244_p0 }
   0x9   :  { %252 = shalt.err (!%p249_p2)
}
   0xa   :  { %s253_s20 = scalar_lea.vmem %s21_s10, 256  ;;  %p258_p4 = scmp.lt.s32.totalorder %s21_s10, %s21_s10 }
   0xb   :  { %p254_p3 = scmp.ne.s32.totalorder %s21_s10, %s253_s20  ;;  %p259_p5 = scmp.lt.s32.totalorder %s253_s20, %s253_s20 }
   0xd   :  { %p260_p6 = por %p259_p5, %p258_p4 }
   0xf   :  { %p261_p7 = pnand %p260_p6, %p254_p3 }
  0x11   :  { %264 = shalt.err (!%p261_p7)
}
  0x12   :  { %23 = dma.hbm_to_vmem [thread:$0]  %s383_s0, 256, %s21_s10, [#allocation3]  }
  0x13   :  { %s265_s25 = scalar_lea.hbm %s384_s1, 256 }
  0x14   :  { %p266_p8 = scmp.ne.s32.totalorder %s384_s1, %s265_s25  ;;  %p269_p9 = scmp.lt.u32.totalorder %s265_s25, %s384_s1 }
  0x16   :  { %p271_p10 = pnand %p269_p9, %p266_p8 }
  0x18   :  { %274 = shalt.err (!%p271_p10)
}
  0x19   :  { %s275_s30 = scalar_lea.vmem %s35_s12, 256  ;;  %p280_p12 = scmp.lt.s32.totalorder %s35_s12, %s35_s12 }
  0x1a   :  { %p276_p11 = scmp.ne.s32.totalorder %s35_s12, %s275_s30  ;;  %p281_p13 = scmp.lt.s32.totalorder %s275_s30, %s275_s30 }
  0x1c   :  { %p282_p0 = por %p281_p13, %p280_p12 }
  0x1e   :  { %p283_p1 = pnand %p282_p0, %p276_p11 }
  0x20   :  { %286 = shalt.err (!%p283_p1)
}
  0x21   :  { %37 = dma.hbm_to_vmem [thread:$0]  %s384_s1, 256, %s35_s12, [#allocation6]  }
  0x22   :  { %309 = dma.done.wait [#allocation3], 256  }
  0x23   :  { %310 = vsyncadd [#allocation3], 4294967040 }
  0x24   :  { %311 = dma.done.wait [#allocation6], 256  }
  0x25   :  { %312 = vsyncadd [#allocation6], 4294967040  ;;  %v66_v0 = vlaneseq  ;;  %v317_v1 = vmov 1983009808   ;;  %v51_v5 = vld [vmem:[#allocation2] sm:$0xff]  ;;  %v52_v6 = vld [vmem:[#allocation2 + $0x8] sm:$0xff] }
  0x26   :  { %v64_v2 = vunpack.c.l.s4 %v317_v1  ;;  %v53_v7 = vld [vmem:[#allocation5] sm:$0xff]  ;;  %v54_v8 = vld [vmem:[#allocation5 + $0x8] sm:$0xff]  ;;  %v318_v13 = vmov 1966171168   ;;  %vm104_vm0 = vcmask 1041408   ;;  %s319_s1 = smov [#allocation7]  }
  0x27   :  { %v359_v4 = vshrl.u32 %v66_v0, 7  ;;  %v55_v9 = vsub.f32 %v51_v5, %v53_v7  ;;  %v56_v11 = vsub.f32 %v52_v6, %v54_v8  ;;  %v174_v14 = vunpack.c.l.s4 %v318_v13  ;;  %s227_s4 = sshll.u32 %s319_s1, 4  ;;  %s228_s4 = int_to_ptr.vmem [resolvable:$true] %s227_s4 }
  0x28   :  { %v65_v3 = vunpack.c.0.s8 %v64_v2  ;;  %s287_s5 = scalar_lea.vmem %s228_s4, 128  ;;  %p292_p3 = scmp.lt.s32.totalorder %s228_s4, %s228_s4 }
  0x29   :  { %v57_v12 = vmul.f32 %v55_v9, %v55_v9  ;;  %v58_v15 = vmul.f32 %v56_v11, %v56_v11  ;;  %v175_v23 = vunpack.c.0.s8 %v174_v14  ;;  %p288_p2 = scmp.ne.s32.totalorder %s228_s4, %s287_s5  ;;  %p293_p4 = scmp.lt.s32.totalorder %s287_s5, %s287_s5 }
  0x2a   :  { %v68_v10 = vsub.s32 %v65_v3, %v359_v4 }
  0x2b   :  { %v62_v16 = vcombine.high %v57_v12, %v57_v12  ;;  %v79_v18 = vcombine.high %v58_v15, %v58_v15  ;;  %v178_v11 = vsub.s32 %v175_v23, %v359_v4  ;;  %p294_p5 = por %p293_p4, %p292_p3 }
  0x2c   :  { %v69_v17 = vrot.slane %v57_v12, %v68_v10  ;;  %v86_v19 = vrot.slane %v58_v15, %v68_v10 }
  0x2d   :  { %v76_v20 = vrot.slane %v62_v16, %v68_v10  ;;  %v93_v24 = vrot.slane %v79_v18, %v68_v10  ;;  %p295_p6 = pnand %p294_p5, %p288_p2 }
  0x2e   :  { %v77_v21 = vcombine.high %v69_v17, %v69_v17  ;;  %v105_v22 = vsel %vm104_vm0, %v69_v17, 0.0  ;;  %v94_v25 = vcombine.high %v86_v19, %v86_v19  ;;  %v133_v27 = vsel %vm104_vm0, %v86_v19, 0.0 }
  0x2f   :  { %v106_v26 = vrot.slane %v105_v22, 4  ;;  %v78_v28 = vcombine.high %v76_v20, %v76_v20  ;;  %v119_v30 = vsel %vm104_vm0, %v76_v20, 0.0  ;;  %v134_v31 = vrot.slane %v133_v27, 4 }
  0x30   :  { %v112_v29 = vsel %vm104_vm0, %v77_v21, 0.0  ;;  %v95_v32 = vcombine.high %v93_v24, %v93_v24  ;;  %v120_v35 = vrot.slane %v119_v30, 4  ;;  %v140_v38 = vsel %vm104_vm0, %v94_v25, 0.0 }
  0x31   :  { %v107_v33 = vadd.f32 %v106_v26, %v105_v22  ;;  %v113_v34 = vrot.slane %v112_v29, 4  ;;  %v126_v36 = vsel %vm104_vm0, %v78_v28, 0.0  ;;  %v135_v37 = vadd.f32 %v134_v31, %v133_v27 }
  0x32   :  { %v147_v39 = vsel %vm104_vm0, %v93_v24, 0.0  ;;  %v121_v42 = vadd.f32 %v120_v35, %v119_v30  ;;  %v127_v43 = vrot.slane %v126_v36, 4  ;;  %v141_v45 = vrot.slane %v140_v38, 4 }
  0x33   :  { %v108_v40 = vrot.slane %v107_v33, 2  ;;  %v114_v41 = vadd.f32 %v113_v34, %v112_v29  ;;  %v136_v44 = vrot.slane %v135_v37, 2  ;;  %v148_v46 = vrot.slane %v147_v39, 4 }
  0x34   :  { %v154_v47 = vsel %vm104_vm0, %v95_v32, 0.0  ;;  %v122_v50 = vrot.slane %v121_v42, 2  ;;  %v128_v51 = vadd.f32 %v127_v43, %v126_v36  ;;  %v142_v53 = vadd.f32 %v141_v45, %v140_v38 }
  0x35   :  { %v109_v48 = vadd.f32 %v108_v40, %v107_v33  ;;  %v115_v49 = vrot.slane %v114_v41, 2  ;;  %v137_v52 = vadd.f32 %v136_v44, %v135_v37  ;;  %v149_v54 = vadd.f32 %v148_v46, %v147_v39 }
  0x36   :  { %v155_v55 = vrot.slane %v154_v47, 4  ;;  %v123_v58 = vadd.f32 %v122_v50, %v121_v42  ;;  %v129_v59 = vrot.slane %v128_v51, 2  ;;  %v143_v61 = vrot.slane %v142_v53, 2 }
  0x37   :  { %v110_v56 = vrot.slane %v109_v48, 1  ;;  %v116_v57 = vadd.f32 %v115_v49, %v114_v41  ;;  %v138_v60 = vrot.slane %v137_v52, 1  ;;  %v150_v62 = vrot.slane %v149_v54, 2 }
  0x38   :  { %v156_v63 = vadd.f32 %v155_v55, %v154_v47  ;;  %v124_v2 = vrot.slane %v123_v58, 1  ;;  %v130_v3 = vadd.f32 %v129_v59, %v128_v51  ;;  %v144_v5 = vadd.f32 %v143_v61, %v142_v53 }
  0x39   :  { %v111_v0 = vadd.f32 %v110_v56, %v109_v48  ;;  %v117_v1 = vrot.slane %v116_v57, 1  ;;  %v151_v6 = vadd.f32 %v150_v62, %v149_v54  ;;  %v139_v12 = vadd.f32 %v138_v60, %v137_v52 }
  0x3a   :  { %v157_v7 = vrot.slane %v156_v63, 2  ;;  %v125_v9 = vadd.f32 %v124_v2, %v123_v58  ;;  %v131_v10 = vrot.slane %v130_v3, 1  ;;  %v145_v13 = vrot.slane %v144_v5, 1 }
  0x3b   :  { %v118_v8 = vadd.f32 %v117_v1, %v116_v57  ;;  %v152_v14 = vrot.slane %v151_v6, 1 }
  0x3c   :  { %v158_v15 = vadd.f32 %v157_v7, %v156_v63  ;;  %v132_v16 = vadd.f32 %v131_v10, %v130_v3  ;;  %v146_v18 = vadd.f32 %v145_v13, %v144_v5 }
  0x3d   :  { %v169_v17 = vcombine.low %v111_v0, %v118_v8  ;;  %v153_v19 = vadd.f32 %v152_v14, %v151_v6 }
  0x3e   :  { %v159_v20 = vrot.slane %v158_v15, 1  ;;  %v170_v21 = vcombine.low %v125_v9, %v132_v16  ;;  %v171_v25 = vcombine.low %v139_v12, %v146_v18 }
  0x3f   :  { %v179_v22 = vrot.slane %v169_v17, %v178_v11 }
  0x40   :  { %v160_v24 = vadd.f32 %v159_v20, %v158_v15  ;;  %v186_v26 = vrot.slane %v170_v21, %v178_v11  ;;  %v193_v28 = vrot.slane %v171_v25, %v178_v11 }
  0x42   :  { %v172_v27 = vcombine.low %v153_v19, %v160_v24  ;;  %v201_v29 = vcombine.low %v179_v22, %v186_v26 }
  0x44   :  { %v200_v30 = vrot.slane %v172_v27, %v178_v11  ;;  %v209_v4 = vrot.slane %v201_v29, %v178_v11 }
  0x46   :  { %v202_v31 = vcombine.low %v193_v28, %v200_v30 }
  0x48   :  { %v216_v23 = vrot.slane %v202_v31, %v178_v11 }
  0x4a   :  { %v217_v32 = vcombine.low %v209_v4, %v216_v23 }
  0x4c   :  { %220 = vst [vmem:[#allocation7] sm:$0xff] %v217_v32 }
  0x4d   :  { %298 = shalt.err (!%p295_p6)
}
  0x4e   :  { %s299_s8 = scalar_lea.hbm %s385_s2, 128 }
  0x4f   :  { %p300_p7 = scmp.ne.s32.totalorder %s385_s2, %s299_s8  ;;  %p303_p8 = scmp.lt.u32.totalorder %s299_s8, %s385_s2 }
  0x51   :  { %p305_p9 = pnand %p303_p8, %p300_p7 }
  0x53   :  { %308 = shalt.err (!%p305_p9)
}
  0x54   :  { %230 = dma.vmem_to_hbm [thread:$0]  %s228_s4, 128, %s385_s2, [#allocation4]  }
  0x55   :  { %313 = dma.done.wait [#allocation4], 128  }
  0x56   :  { %314 = vsyncadd [#allocation4], 4294967168 }
  0x57   :  { %234 = vsyncpa [#allocation3], 1 }
  0x58   :  { %235 = vsyncpa [#allocation6], 1 }
  0x59   :  { %236 = vsyncpa [#allocation4], 1 }

</bundles_post_ra>
